<compile_context>
chip_gen: v5e
topology: v5e:2x2
jax: 0.10.0
libtpu: 0.0.40
codegen_flags: <defaults>
</compile_context>

<pallas_src>
import math

import jax
import jax.numpy as jnp
from jax.experimental import pallas as pl
from jax.experimental.pallas import tpu as pltpu

K_IN = 28 * 28          # 784
K_PAD = 896             # 7 * 128 (lane-dense K)
HIDDEN = 256
N_OUT = 10
N_PAD = 128             # lane-dense output width


def _round_up(x, m):
    return ((x + m - 1) // m) * m


def _mlp_kernel(x_ref, w1_ref, b1_ref, w2_ref, b2_ref, o_ref):
    # Layer 1: (TB, 896)bf16 @ (896, 256)bf16 -> f32 accumulate on MXU.
    h = jnp.dot(x_ref[...], w1_ref[...], preferred_element_type=jnp.float32)
    # Bias + ReLU in f32 on the VPU (v5e has no bf16 VPU path).
    h = jnp.maximum(h + b1_ref[...], 0.0)
    # Layer 2: cast activations to bf16 for the MXU, accumulate in f32.
    out = jnp.dot(h.astype(w2_ref.dtype), w2_ref[...],
                  preferred_element_type=jnp.float32)
    o_ref[...] = (out + b2_ref[...]).astype(o_ref.dtype)


def two_layer_mlp(x_nchw, w1, b1, w2, b2, *, tb=1024):
    """Forward pass matching TwoLayerMLP.forward.

    x_nchw: (B, C, H, W) with C*H*W == 784
    w1: (784, 256), b1: (256,), w2: (256, 10), b2: (10,)
    returns logits: (B, 10) float32
    """
    B = x_nchw.shape[0]
    x = x_nchw.reshape(B, -1)                       # nn.Flatten()
    assert x.shape[1] == K_IN

    # --- batch tiling: tile must be a multiple of 16 (bf16 sublane pack); for
    # tiny demo batches shrink the tile instead of padding B up to `tb`.
    tb_eff = min(tb, max(16, _round_up(B, 16)))
    tb_eff = _round_up(tb_eff, 16)
    b_pad = _round_up(B, tb_eff)
    grid = (b_pad // tb_eff,)

    # --- lane-dense, bf16 operand prep (wrapper-side layout plumbing).
    xp = jnp.pad(x.astype(jnp.bfloat16), ((0, b_pad - B), (0, K_PAD - K_IN)))
    w1p = jnp.pad(w1.astype(jnp.bfloat16), ((0, K_PAD - K_IN), (0, 0)))
    b1p = b1.reshape(1, HIDDEN).astype(jnp.float32)
    w2p = jnp.pad(w2.astype(jnp.bfloat16), ((0, 0), (0, N_PAD - N_OUT)))
    b2p = jnp.pad(b2.astype(jnp.float32), (0, N_PAD - N_OUT)).reshape(1, N_PAD)
    # TODO(synk): on v7x, fp8 weight quantization is an option if accuracy allows.

    # --- right-size the scoped VMEM limit from the tiling (double-buffered x
    # and output tiles + resident weights + headroom), capped below v7x's
    # 64 MiB physical VMEM.
    bytes_x_tile = tb_eff * K_PAD * 2
    bytes_o_tile = tb_eff * N_PAD * 4
    bytes_weights = K_PAD * HIDDEN * 2 + HIDDEN * N_PAD * 2 + (HIDDEN + N_PAD) * 4
    vmem_need = 2 * (bytes_x_tile + bytes_o_tile) + 2 * bytes_weights
    vmem_limit = min(max(vmem_need + (8 << 20), 16 << 20), 48 << 20)

    cost = pl.CostEstimate(
        flops=2 * b_pad * (K_PAD * HIDDEN + HIDDEN * N_PAD),
        transcendentals=0,
        bytes_accessed=(b_pad * K_PAD * 2                         # x stream (bf16)
                        + K_PAD * HIDDEN * 2 + HIDDEN * N_PAD * 2  # weights
                        + b_pad * N_PAD * 4),                      # output
    )

    out = pl.pallas_call(
        _mlp_kernel,
        out_shape=jax.ShapeDtypeStruct((b_pad, N_PAD), jnp.float32),
        grid=grid,
        in_specs=[
            pl.BlockSpec((tb_eff, K_PAD), lambda i: (i, 0)),   # x: batch-tiled
            pl.BlockSpec((K_PAD, HIDDEN), lambda i: (0, 0)),   # w1: resident
            pl.BlockSpec((1, HIDDEN), lambda i: (0, 0)),       # b1: resident
            pl.BlockSpec((HIDDEN, N_PAD), lambda i: (0, 0)),   # w2: resident
            pl.BlockSpec((1, N_PAD), lambda i: (0, 0)),        # b2: resident
        ],
        out_specs=pl.BlockSpec((tb_eff, N_PAD), lambda i: (i, 0)),
        compiler_params=pltpu.CompilerParams(
            dimension_semantics=("parallel",),   # megacore / v7x 2-TC sharding
            vmem_limit_bytes=vmem_limit,
        ),
        cost_estimate=cost,
    )(xp, w1p, b1p, w2p, b2p)

    # Strip the batch and lane padding outside the kernel.
    return out[:B, :N_OUT]


def init_params(key):
    """Deterministic init mirroring nn.Linear defaults: U(-1/sqrt(fan_in), +)."""
    k1, k2, k3, k4 = jax.random.split(key, 4)
    bound1 = 1.0 / math.sqrt(K_IN)
    w1 = jax.random.uniform(k1, (K_IN, HIDDEN), jnp.float32, -bound1, bound1)
    b1 = jax.random.uniform(k2, (HIDDEN,), jnp.float32, -bound1, bound1)
    bound2 = 1.0 / math.sqrt(HIDDEN)
    w2 = jax.random.uniform(k3, (HIDDEN, N_OUT), jnp.float32, -bound2, bound2)
    b2 = jax.random.uniform(k4, (N_OUT,), jnp.float32, -bound2, bound2)
    return w1, b1, w2, b2


if __name__ == "__main__":
    key = jax.random.PRNGKey(0)
    k_x, k_p = jax.random.split(key)

    # MNIST-like input: (batch=2, channels=1, 28, 28) NCHW
    x = jax.random.normal(k_x, (2, 1, 28, 28), jnp.float32)
    w1, b1, w2, b2 = init_params(k_p)

    logits = two_layer_mlp(x, w1, b1, w2, b2)
    logits = jax.block_until_ready(logits)
    assert logits.shape == (2, 10)

    # Reference checks: tight vs. a bf16-operand reference, loose vs. full f32.
    x_flat = x.reshape(x.shape[0], -1)
    h_bf = jnp.maximum(
        jnp.dot(x_flat.astype(jnp.bfloat16), w1.astype(jnp.bfloat16),
                preferred_element_type=jnp.float32) + b1, 0.0)
    ref_bf = jnp.dot(h_bf.astype(jnp.bfloat16), w2.astype(jnp.bfloat16),
                     preferred_element_type=jnp.float32) + b2
    ref_f32 = jnp.maximum(x_flat @ w1 + b1, 0.0) @ w2 + b2
    assert jnp.allclose(logits, ref_bf, atol=1e-3, rtol=1e-3)
    assert jnp.allclose(logits, ref_f32, atol=3e-2, rtol=3e-2)

    print("KERNEL_OK")
</pallas_src>

<mosaic_0001>
module attributes {stable_mosaic.version = 11 : i64} {
  func.func @_mlp_kernel(%arg0: i32, %arg1: memref<16x896xbf16, #tpu.memory_space<vmem>>, %arg2: memref<896x256xbf16, #tpu.memory_space<vmem>>, %arg3: memref<1x256xf32, #tpu.memory_space<vmem>>, %arg4: memref<256x128xbf16, #tpu.memory_space<vmem>>, %arg5: memref<1x128xf32, #tpu.memory_space<vmem>>, %arg6: memref<16x128xf32, #tpu.memory_space<vmem>>) attributes {dimension_semantics = [#tpu.dimension_semantics<parallel>], iteration_bounds = array<i64: 1>, scalar_prefetch = 0 : i64, scratch_operands = 0 : i64, tpu.core_type = #tpu.core_type<tc>, window_params = [{transform_indices = @transform_0, window_bounds = array<i64: 16, 896>}, {pipeline_mode = #tpu.pipeline_mode<synchronous>, transform_indices = @transform_1, window_bounds = array<i64: 896, 256>}, {pipeline_mode = #tpu.pipeline_mode<synchronous>, transform_indices = @transform_2, window_bounds = array<i64: 1, 256>}, {pipeline_mode = #tpu.pipeline_mode<synchronous>, transform_indices = @transform_3, window_bounds = array<i64: 256, 128>}, {pipeline_mode = #tpu.pipeline_mode<synchronous>, transform_indices = @transform_4, window_bounds = array<i64: 1, 128>}, {transform_indices = @transform_5, window_bounds = array<i64: 16, 128>}]} {
    %c0 = arith.constant 0 : index
    %c0_0 = arith.constant 0 : index
    %0 = vector.load %arg1[%c0, %c0_0] : memref<16x896xbf16, #tpu.memory_space<vmem>>, vector<16x896xbf16>
    %c0_1 = arith.constant 0 : index
    %c0_2 = arith.constant 0 : index
    %1 = vector.load %arg2[%c0_1, %c0_2] : memref<896x256xbf16, #tpu.memory_space<vmem>>, vector<896x256xbf16>
    %cst = arith.constant dense<0.000000e+00> : vector<16x256xf32>
    %2 = tpu.matmul %0, %1, %cst {dimension_numbers = #tpu.dot_dimension_numbers<[1], [0], [0], [1], [0, 0, 1, 1], [], []>} : vector<16x896xbf16>, vector<896x256xbf16>, vector<16x256xf32> -> vector<16x256xf32>
    %c0_3 = arith.constant 0 : index
    %c0_4 = arith.constant 0 : index
    %3 = vector.load %arg3[%c0_3, %c0_4] : memref<1x256xf32, #tpu.memory_space<vmem>>, vector<1x256xf32>
    %4 = vector.broadcast %3 : vector<1x256xf32> to vector<16x256xf32>
    %5 = arith.addf %2, %4 : vector<16x256xf32>
    %cst_5 = arith.constant 0.000000e+00 : f32
    %6 = vector.broadcast %cst_5 : f32 to vector<16x256xf32>
    %7 = arith.maximumf %5, %6 : vector<16x256xf32>
    %8 = arith.truncf %7 : vector<16x256xf32> to vector<16x256xbf16>
    %c0_6 = arith.constant 0 : index
    %c0_7 = arith.constant 0 : index
    %9 = vector.load %arg4[%c0_6, %c0_7] : memref<256x128xbf16, #tpu.memory_space<vmem>>, vector<256x128xbf16>
    %cst_8 = arith.constant dense<0.000000e+00> : vector<16x128xf32>
    %10 = tpu.matmul %8, %9, %cst_8 {dimension_numbers = #tpu.dot_dimension_numbers<[1], [0], [0], [1], [0, 0, 1, 1], [], []>} : vector<16x256xbf16>, vector<256x128xbf16>, vector<16x128xf32> -> vector<16x128xf32>
    %c0_9 = arith.constant 0 : index
    %c0_10 = arith.constant 0 : index
    %11 = vector.load %arg5[%c0_9, %c0_10] : memref<1x128xf32, #tpu.memory_space<vmem>>, vector<1x128xf32>
    %12 = vector.broadcast %11 : vector<1x128xf32> to vector<16x128xf32>
    %13 = arith.addf %10, %12 : vector<16x128xf32>
    %c0_11 = arith.constant 0 : index
    %c0_12 = arith.constant 0 : index
    %14 = vector.load %arg6[%c0_11, %c0_12] : memref<16x128xf32, #tpu.memory_space<vmem>>, vector<16x128xf32>
    tpu.vector_store %arg6[%c0_11, %c0_12], %13 {strides = array<i32>} : memref<16x128xf32, #tpu.memory_space<vmem>>, vector<16x128xf32>,
    return
  }
  func.func @transform_0(%arg0: i32) -> (i32, i32) {
    %c0_i32 = arith.constant 0 : i32
    %c0_i32_0 = arith.constant 0 : i32
    return %arg0, %c0_i32 : i32, i32
  }
  func.func @transform_1(%arg0: i32) -> (i32, i32) {
    %c0_i32 = arith.constant 0 : i32
    %c0_i32_0 = arith.constant 0 : i32
    %c0_i32_1 = arith.constant 0 : i32
    return %c0_i32, %c0_i32_0 : i32, i32
  }
  func.func @transform_2(%arg0: i32) -> (i32, i32) {
    %c0_i32 = arith.constant 0 : i32
    %c0_i32_0 = arith.constant 0 : i32
    %c0_i32_1 = arith.constant 0 : i32
    return %c0_i32, %c0_i32_0 : i32, i32
  }
  func.func @transform_3(%arg0: i32) -> (i32, i32) {
    %c0_i32 = arith.constant 0 : i32
    %c0_i32_0 = arith.constant 0 : i32
    %c0_i32_1 = arith.constant 0 : i32
    return %c0_i32, %c0_i32_0 : i32, i32
  }
  func.func @transform_4(%arg0: i32) -> (i32, i32) {
    %c0_i32 = arith.constant 0 : i32
    %c0_i32_0 = arith.constant 0 : i32
    %c0_i32_1 = arith.constant 0 : i32
    return %c0_i32, %c0_i32_0 : i32, i32
  }
  func.func @transform_5(%arg0: i32) -> (i32, i32) {
    %c0_i32 = arith.constant 0 : i32
    %c0_i32_0 = arith.constant 0 : i32
    return %arg0, %c0_i32 : i32, i32
  }
}

</mosaic_0001>

<bundles_post_ra>
// kernel: tpu_custom_call.1
= control target key start
LH: loop header
LB: loop body
LE: loop exit
PB: predicated region body
PF: predicated region fallthrough
CT: control target
= control target key end

     0   :  { %10 = vsyncpa [#allocation3], 0  ;;  %s2097_s0 = inlined_call_operand.hbm [shape: bf16[16,896], index: 0, kind: input, shape index: {}]   ;;  %s2098_s1 = inlined_call_operand.hbm [shape: bf16[896,256], index: 1, kind: input, shape index: {}]   ;;  %s2099_s2 = inlined_call_operand.hbm [shape: f32[1,256], index: 2, kind: input, shape index: {}]   ;;  %s2100_s3 = inlined_call_operand.hbm [shape: bf16[256,128], index: 3, kind: input, shape index: {}]   ;;  %s2101_s4 = inlined_call_operand.vmem [shape: f32[1,128], index: 4, kind: input, shape index: {}]   ;;  %s2102_s5 = inlined_call_operand.hbm [shape: f32[16,128], index: 5, kind: output, shape index: {}]  }
   0x1   :  { %11 = vsyncpa [#allocation6], 0 }
   0x2   :  { %12 = vsyncpa [#allocation9], 0  ;;  %s31_s20 = sshll.u32 %s2098_s1, 4  ;;  %s32_s20 = int_to_ptr.hbm [resolvable:$true] %s31_s20 }
   0x3   :  { %13 = vsyncpa [#allocation4], 0  ;;  %s2004_s21 = smov [#allocation5]   ;;  %s18_s25 = sshll.u32 %s2097_s0, 4  ;;  %s19_s25 = int_to_ptr.hbm [resolvable:$true] %s18_s25 }
   0x4   :  { %s33_s22 = sshll.u32 %s2004_s21, 4  ;;  %s2005_s26 = smov 128   ;;  %s34_s22 = int_to_ptr.vmem [resolvable:$true] %s33_s22 }
   0x5   :  { %s2006_s27 = smov 8   ;;  %s2007_s28 = smov [#allocation2]  }
   0x6   :  { %39 = dma.hbm_to_vmem [thread:$0]  %s32_s20, 14336, %s34_s22, [#allocation6], %s2005_s26, %s2005_s26, %s2006_s27  }
   0x7   :  { %s20_s29 = sshll.u32 %s2007_s28, 4  ;;  %s2008_s1 = smov 448   ;;  %s21_s29 = int_to_ptr.vmem [resolvable:$true] %s20_s29 }
   0x8   :  { %s2009_s30 = smov 28   ;;  %s45_s8 = sshll.u32 %s2099_s2, 4  ;;  %s46_s8 = int_to_ptr.hbm [resolvable:$true] %s45_s8 }
   0x9   :  { %26 = dma.hbm_to_vmem [thread:$0]  %s19_s25, 896, %s21_s29, [#allocation3], %s2008_s1, %s2008_s1, %s2009_s30  }
   0xa   :  { %s2010_s9 = smov [#allocation7]   ;;  %s55_s12 = sshll.u32 %s2100_s3, 4  ;;  %s56_s12 = int_to_ptr.hbm [resolvable:$true] %s55_s12 }
   0xb   :  { %s47_s0 = sshll.u32 %s2010_s9, 4  ;;  %s2011_s13 = smov [#allocation8]   ;;  %s48_s0 = int_to_ptr.vmem [resolvable:$true] %s47_s0 }
   0xc   :  { %50 = dma.hbm_to_vmem [thread:$0]  %s46_s8, 32, %s48_s0, [#allocation6]  }
   0xd   :  { %s57_s14 = sshll.u32 %s2011_s13, 4  ;;  %s2012_s15 = smov 64   ;;  %s58_s14 = int_to_ptr.vmem [resolvable:$true] %s57_s14 }
   0xe   :  { %s2013_s16 = smov 4  }
   0xf   :  { %63 = dma.hbm_to_vmem [thread:$0]  %s56_s12, 2048, %s58_s14, [#allocation9], %s2012_s15, %s2012_s15, %s2013_s16  }
  0x10   :  { %1996 = dma.done.wait [#allocation3], 896  }
  0x11   :  { %1997 = vsyncadd [#allocation3], 4294966400 }
  0x12   :  { %1998 = dma.done.wait [#allocation6], 14368  }
  0x13   :  { %1999 = vsyncadd [#allocation6], 4294952928 }
  0x14   :  { %2000 = dma.done.wait [#allocation9], 2048  }
  0x15   :  { %2001 = vsyncadd [#allocation9], 4294965248  ;;  %v1275_v0 = vld [vmem:[#allocation5 + $0x70] sm:$0xf]  ;;  %v1751_v1 = vld [vmem:[#allocation5 + $0x74] sm:$0xf0] }
  0x16   :  { %v1339_v2 = vld [vmem:[#allocation5 + $0xf0] sm:$0xf]  ;;  %v1276_v3 = vor.u32 %v1751_v1, %v1275_v0  ;;  %v1767_v4 = vld [vmem:[#allocation5 + $0xf4] sm:$0xf0]  ;;  %v1267_v9 = vld [vmem:[#allocation5 + $0x60] sm:$0xf] }
  0x17   :  { %v1403_v5 = vld [vmem:[#allocation5 + $0x170] sm:$0xf]  ;;  %v1783_v6 = vld [vmem:[#allocation5 + $0x174] sm:$0xf0]  ;;  %v1340_v7 = vor.u32 %v1767_v4, %v1339_v2  ;;  %v1749_v10 = vld [vmem:[#allocation5 + $0x64] sm:$0xf0] }
  0x18   :  { %v1404_v8 = vor.u32 %v1783_v6, %v1403_v5  ;;  %v1331_v11 = vld [vmem:[#allocation5 + $0xe0] sm:$0xf]  ;;  %804 = vmatpush.bf16.msra.mxu0 %v1276_v3  ;;  %v1268_v12 = vor.u32 %v1749_v10, %v1267_v9  ;;  %v1765_v13 = vld [vmem:[#allocation5 + $0xe4] sm:$0xf0]  ;;  %v1467_v18 = vld [vmem:[#allocation5 + $0x1f0] sm:$0xf] }
  0x19   :  { %v1395_v14 = vld [vmem:[#allocation5 + $0x160] sm:$0xf]  ;;  %v1781_v15 = vld [vmem:[#allocation5 + $0x164] sm:$0xf0]  ;;  %818 = vmatpush.bf16.msra.mxu1 %v1340_v7  ;;  %v1332_v16 = vor.u32 %v1765_v13, %v1331_v11  ;;  %v1799_v19 = vld [vmem:[#allocation5 + $0x1f4] sm:$0xf0] }
  0x1a   :  { %832 = vmatpush.bf16.msra.mxu2 %v1404_v8  ;;  %v1396_v17 = vor.u32 %v1781_v15, %v1395_v14  ;;  %v1259_v20 = vld [vmem:[#allocation5 + $0x50] sm:$0xf]  ;;  %v1468_v21 = vor.u32 %v1799_v19, %v1467_v18  ;;  %v1747_v22 = vld [vmem:[#allocation5 + $0x54] sm:$0xf0]  ;;  %v1459_v27 = vld [vmem:[#allocation5 + $0x1e0] sm:$0xf] }
  0x1b   :  { %v1323_v23 = vld [vmem:[#allocation5 + $0xd0] sm:$0xf]  ;;  %v1763_v24 = vld [vmem:[#allocation5 + $0xd4] sm:$0xf0]  ;;  %v1260_v28 = vor.u32 %v1747_v22, %v1259_v20  ;;  %v1797_v29 = vld [vmem:[#allocation5 + $0x1e4] sm:$0xf0] }
  0x1c   :  { %v1387_v25 = vld [vmem:[#allocation5 + $0x150] sm:$0xf]  ;;  %v1779_v26 = vld [vmem:[#allocation5 + $0x154] sm:$0xf0]  ;;  %805 = vmatpush.bf16.msra.mxu0 %v1268_v12  ;;  %846 = vmatpush.bf16.msra.mxu3 %v1468_v21  ;;  %v1251_v30 = vld [vmem:[#allocation5 + $0x40] sm:$0xf]  ;;  %v1324_v32 = vor.u32 %v1763_v24, %v1323_v23  ;;  %v1460_v34 = vor.u32 %v1797_v29, %v1459_v27 }
  0x1d   :  { %v1745_v31 = vld [vmem:[#allocation5 + $0x44] sm:$0xf0]  ;;  %819 = vmatpush.bf16.msra.mxu1 %v1332_v16  ;;  %v1388_v33 = vor.u32 %v1779_v26, %v1387_v25  ;;  %v1315_v35 = vld [vmem:[#allocation5 + $0xc0] sm:$0xf]  ;;  %v1451_v39 = vld [vmem:[#allocation5 + $0x1d0] sm:$0xf] }
  0x1e   :  { %833 = vmatpush.bf16.msra.mxu2 %v1396_v17  ;;  %v1761_v36 = vld [vmem:[#allocation5 + $0xc4] sm:$0xf0]  ;;  %v1379_v37 = vld [vmem:[#allocation5 + $0x140] sm:$0xf]  ;;  %v1795_v40 = vld [vmem:[#allocation5 + $0x1d4] sm:$0xf0]  ;;  %v1252_v41 = vor.u32 %v1745_v31, %v1251_v30 }
  0x1f   :  { %v1777_v38 = vld [vmem:[#allocation5 + $0x144] sm:$0xf0]  ;;  %v1452_v42 = vor.u32 %v1795_v40, %v1451_v39  ;;  %v1243_v43 = vld [vmem:[#allocation5 + $0x30] sm:$0xf]  ;;  %v1743_v44 = vld [vmem:[#allocation5 + $0x34] sm:$0xf0]  ;;  %v1316_v45 = vor.u32 %v1761_v36, %v1315_v35 }
  0x20   :  { %806 = vmatpush.bf16.msra.mxu0 %v1260_v28  ;;  %847 = vmatpush.bf16.msra.mxu3 %v1460_v34  ;;  %v1380_v46 = vor.u32 %v1777_v38, %v1379_v37  ;;  %v1307_v47 = vld [vmem:[#allocation5 + $0xb0] sm:$0xf]  ;;  %v1443_v48 = vld [vmem:[#allocation5 + $0x1c0] sm:$0xf]  ;;  %v1793_v49 = vld [vmem:[#allocation5 + $0x1c4] sm:$0xf0]  ;;  %v1244_v53 = vor.u32 %v1743_v44, %v1243_v43 }
  0x21   :  { %820 = vmatpush.bf16.msra.mxu1 %v1324_v32  ;;  %v1759_v50 = vld [vmem:[#allocation5 + $0xb4] sm:$0xf0]  ;;  %v1371_v51 = vld [vmem:[#allocation5 + $0x130] sm:$0xf]  ;;  %v1444_v54 = vor.u32 %v1793_v49, %v1443_v48  ;;  %v1235_v55 = vld [vmem:[#allocation5 + $0x20] sm:$0xf] }
  0x22   :  { %834 = vmatpush.bf16.msra.mxu2 %v1388_v33  ;;  %v1775_v52 = vld [vmem:[#allocation5 + $0x134] sm:$0xf0]  ;;  %v1741_v56 = vld [vmem:[#allocation5 + $0x24] sm:$0xf0]  ;;  %v1308_v57 = vor.u32 %v1759_v50, %v1307_v47  ;;  %v1299_v59 = vld [vmem:[#allocation5 + $0xa0] sm:$0xf] }
  0x23   :  { %v1372_v58 = vor.u32 %v1775_v52, %v1371_v51  ;;  %v1435_v60 = vld [vmem:[#allocation5 + $0x1b0] sm:$0xf]  ;;  %v1791_v61 = vld [vmem:[#allocation5 + $0x1b4] sm:$0xf0]  ;;  %v1757_v62 = vld [vmem:[#allocation5 + $0xa4] sm:$0xf0]  ;;  %v1236_v1 = vor.u32 %v1741_v56, %v1235_v55 }
  0x24   :  { %807 = vmatpush.bf16.msra.mxu0 %v1252_v41  ;;  %848 = vmatpush.bf16.msra.mxu3 %v1452_v42  ;;  %v1363_v63 = vld [vmem:[#allocation5 + $0x120] sm:$0xf]  ;;  %v1773_v0 = vld [vmem:[#allocation5 + $0x124] sm:$0xf0]  ;;  %v1436_v2 = vor.u32 %v1791_v61, %v1435_v60  ;;  %v1227_v3 = vld [vmem:[#allocation5 + $0x10] sm:$0xf]  ;;  %v1300_v5 = vor.u32 %v1757_v62, %v1299_v59 }
  0x25   :  { %821 = vmatpush.bf16.msra.mxu1 %v1316_v45  ;;  %v1739_v4 = vld [vmem:[#allocation5 + $0x14] sm:$0xf0]  ;;  %v1364_v6 = vor.u32 %v1773_v0, %v1363_v63  ;;  %v1291_v7 = vld [vmem:[#allocation5 + $0x90] sm:$0xf]  ;;  %v1427_v8 = vld [vmem:[#allocation5 + $0x1a0] sm:$0xf] }
  0x26   :  { %835 = vmatpush.bf16.msra.mxu2 %v1380_v46  ;;  %v1789_v9 = vld [vmem:[#allocation5 + $0x1a4] sm:$0xf0]  ;;  %v1755_v10 = vld [vmem:[#allocation5 + $0x94] sm:$0xf0]  ;;  %v1355_v11 = vld [vmem:[#allocation5 + $0x110] sm:$0xf]  ;;  %v1228_v13 = vor.u32 %v1739_v4, %v1227_v3 }
  0x27   :  { %v1771_v12 = vld [vmem:[#allocation5 + $0x114] sm:$0xf0]  ;;  %v1428_v14 = vor.u32 %v1789_v9, %v1427_v8  ;;  %v1219_v15 = vld [vmem:[#allocation5] sm:$0xf]  ;;  %v1737_v16 = vld [vmem:[#allocation5 + $0x4] sm:$0xf0]  ;;  %v1292_v18 = vor.u32 %v1755_v10, %v1291_v7 }
  0x28   :  { %808 = vmatpush.bf16.msra.mxu0 %v1244_v53  ;;  %849 = vmatpush.bf16.msra.mxu3 %v1444_v54  ;;  %v1283_v17 = vld [vmem:[#allocation5 + $0x80] sm:$0xf]  ;;  %v1356_v19 = vor.u32 %v1771_v12, %v1355_v11  ;;  %v1753_v20 = vld [vmem:[#allocation5 + $0x84] sm:$0xf0]  ;;  %v1419_v21 = vld [vmem:[#allocation5 + $0x190] sm:$0xf]  ;;  %v1220_v29 = vor.u32 %v1737_v16, %v1219_v15 }
  0x29   :  { %822 = vmatpush.bf16.msra.mxu1 %v1308_v57  ;;  %v1787_v22 = vld [vmem:[#allocation5 + $0x194] sm:$0xf0]  ;;  %v1347_v23 = vld [vmem:[#allocation5 + $0x100] sm:$0xf]  ;;  %v1769_v24 = vld [vmem:[#allocation5 + $0x104] sm:$0xf0]  ;;  %v1284_v33 = vor.u32 %v1753_v20, %v1283_v17 }
  0x2a   :  { %836 = vmatpush.bf16.msra.mxu2 %v1372_v58  ;;  %v1531_v25 = vld [vmem:[#allocation5 + $0x270] sm:$0xf]  ;;  %v1815_v26 = vld [vmem:[#allocation5 + $0x274] sm:$0xf0]  ;;  %v1420_v30 = vor.u32 %v1787_v22, %v1419_v21  ;;  %v1348_v34 = vor.u32 %v1769_v24, %v1347_v23  ;;  %v1411_v35 = vld [vmem:[#allocation5 + $0x180] sm:$0xf] }
  0x2b   :  { %v1595_v27 = vld [vmem:[#allocation5 + $0x2f0] sm:$0xf]  ;;  %v1831_v28 = vld [vmem:[#allocation5 + $0x2f4] sm:$0xf0]  ;;  %v1785_v36 = vld [vmem:[#allocation5 + $0x184] sm:$0xf0]  ;;  %v1532_v38 = vor.u32 %v1815_v26, %v1531_v25 }
  0x2c   :  { %809 = vmatpush.bf16.msra.mxu0 %v1236_v1  ;;  %850 = vmatpush.bf16.msra.mxu3 %v1436_v2  ;;  %v1659_v31 = vld [vmem:[#allocation5 + $0x370] sm:$0xf]  ;;  %v1847_v32 = vld [vmem:[#allocation5 + $0x374] sm:$0xf0]  ;;  %v1523_v37 = vld [vmem:[#allocation5 + $0x260] sm:$0xf]  ;;  %v1596_v39 = vor.u32 %v1831_v28, %v1595_v27  ;;  %v1412_v47 = vor.u32 %v1785_v36, %v1411_v35 }
  0x2d   :  { %823 = vmatpush.bf16.msra.mxu1 %v1300_v5  ;;  %v1813_v40 = vld [vmem:[#allocation5 + $0x264] sm:$0xf0]  ;;  %v1750_v41 = vld [vmem:[#allocation5 + $0x74] sm:$0xf]  ;;  %v1277_v42 = vld [vmem:[#allocation5 + $0x78] sm:$0xf0]  ;;  %v1660_v43 = vor.u32 %v1847_v32, %v1659_v31 }
  0x2e   :  { %837 = vmatpush.bf16.msra.mxu2 %v1364_v6  ;;  %v1587_v44 = vld [vmem:[#allocation5 + $0x2e0] sm:$0xf]  ;;  %v1829_v45 = vld [vmem:[#allocation5 + $0x2e4] sm:$0xf0]  ;;  %v1732_v50 = vld [vmem:[#allocation2 + $0x18] sm:$0xf0]  ;;  %v1280_v51 = vor.u32 %v1750_v41, %v1277_v42  ;;  %v1524_v56 = vor.u32 %v1813_v40, %v1523_v37 }
  0x2f   :  { %v1651_v46 = vld [vmem:[#allocation5 + $0x360] sm:$0xf]  ;;  %v1845_v48 = vld [vmem:[#allocation5 + $0x364] sm:$0xf0]  ;;  %v1515_v52 = vld [vmem:[#allocation5 + $0x250] sm:$0xf]  ;;  %v1588_v57 = vor.u32 %v1829_v45, %v1587_v44 }
  0x30   :  { %810 = vmatpush.bf16.msra.mxu0 %v1228_v13  ;;  %851 = vmatpush.bf16.msra.mxu3 %v1428_v14  ;;  %v1191_v49 = vld [vmem:[#allocation2] sm:$0xf]  ;;  %v1199_v54 = vld [vmem:[#allocation2 + $0x8] sm:$0xf]  ;;  %v1733_v55 = vld [vmem:[#allocation2 + $0x20] sm:$0xf0]  ;;  %v1652_v62 = vor.u32 %v1845_v48, %v1651_v46 }
  0x31   :  { %824 = vmatpush.bf16.msra.mxu1 %v1292_v18  ;;  %v2060_v53 = vor.u32 %v1732_v50, %v1191_v49  ;;  %v1811_v58 = vld [vmem:[#allocation5 + $0x254] sm:$0xf0]  ;;  %v1748_v59 = vld [vmem:[#allocation5 + $0x64] sm:$0xf]  ;;  %v1269_v60 = vld [vmem:[#allocation5 + $0x68] sm:$0xf0]  ;;  %v2062_v61 = vor.u32 %v1733_v55, %v1199_v54 }
  0x32   :  { %838 = vmatpush.bf16.msra.mxu2 %v1356_v19  ;;  %v1579_v63 = vld [vmem:[#allocation5 + $0x2d0] sm:$0xf]  ;;  %v1827_v0 = vld [vmem:[#allocation5 + $0x2d4] sm:$0xf0]  ;;  %v1729_v1 = vld [vmem:[#allocation2 + $0x4] sm:$0xf]  ;;  %v1272_v5 = vor.u32 %v1748_v59, %v1269_v60  ;;  %v1516_v9 = vor.u32 %v1811_v58, %v1515_v52 }
  0x33   :  { %v1643_v2 = vld [vmem:[#allocation5 + $0x350] sm:$0xf]  ;;  %v1843_v3 = vld [vmem:[#allocation5 + $0x354] sm:$0xf0]  ;;  %v1193_v4 = vld [vmem:[#allocation2 + $0x1c] sm:$0xf0]  ;;  %v1580_v10 = vor.u32 %v1827_v0, %v1579_v63 }
  0x34   :  { %811 = vmatpush.bf16.msra.mxu0 %v1220_v29  ;;  %852 = vmatpush.bf16.msra.mxu3 %v1420_v30  ;;  %v1507_v6 = vld [vmem:[#allocation5 + $0x240] sm:$0xf]  ;;  %v1809_v7 = vld [vmem:[#allocation5 + $0x244] sm:$0xf0]  ;;  %v2066_v8 = vor.u32 %v1729_v1, %v1193_v4  ;;  %v1746_v12 = vld [vmem:[#allocation5 + $0x54] sm:$0xf]  ;;  %v1644_v14 = vor.u32 %v1843_v3, %v1643_v2 }
  0x35   :  { %825 = vmatpush.bf16.msra.mxu1 %v1284_v33  ;;  %v1571_v11 = vld [vmem:[#allocation5 + $0x2c0] sm:$0xf]  ;;  %v1261_v13 = vld [vmem:[#allocation5 + $0x58] sm:$0xf0]  ;;  %v1825_v15 = vld [vmem:[#allocation5 + $0x2c4] sm:$0xf0]  ;;  %v1508_v22 = vor.u32 %v1809_v7, %v1507_v6 }
  0x36   :  { %839 = vmatpush.bf16.msra.mxu2 %v1348_v34  ;;  %v1730_v16 = vld [vmem:[#allocation2 + $0xc] sm:$0xf]  ;;  %v1201_v17 = vld [vmem:[#allocation2 + $0x24] sm:$0xf0]  ;;  %v1635_v18 = vld [vmem:[#allocation5 + $0x340] sm:$0xf]  ;;  %v1264_v21 = vor.u32 %v1746_v12, %v1261_v13  ;;  %v1572_v23 = vor.u32 %v1825_v15, %v1571_v11 }
  0x37   :  { %812 = vmatmul.bf16.vlgmr.msra.gmra.mxu0 %v2060_v53  ;;  %v1841_v19 = vld [vmem:[#allocation5 + $0x344] sm:$0xf0]  ;;  %v2069_v20 = vor.u32 %v1730_v16, %v1201_v17  ;;  %v1499_v24 = vld [vmem:[#allocation5 + $0x230] sm:$0xf]  ;;  %v1744_v25 = vld [vmem:[#allocation5 + $0x44] sm:$0xf] }
  0x38   :  { %860 = vmatpush.bf16.msrb.mxu0 %v1532_v38  ;;  %853 = vmatpush.bf16.msra.mxu3 %v1412_v47  ;;  %v1253_v26 = vld [vmem:[#allocation5 + $0x48] sm:$0xf0]  ;;  %v1636_v27 = vor.u32 %v1841_v19, %v1635_v18  ;;  %v1807_v28 = vld [vmem:[#allocation5 + $0x234] sm:$0xf0]  ;;  %v1563_v29 = vld [vmem:[#allocation5 + $0x2b0] sm:$0xf] }
  0x39   :  { %874 = vmatpush.bf16.msrb.mxu1 %v1596_v39  ;;  %840 = vmatmul.bf16.vlgmr.msra.gmra.mxu2 %v2062_v61  ;;  %v1823_v30 = vld [vmem:[#allocation5 + $0x2b4] sm:$0xf0]  ;;  %v1627_v31 = vld [vmem:[#allocation5 + $0x330] sm:$0xf]  ;;  %v1256_v33 = vor.u32 %v1744_v25, %v1253_v26  ;;  %v1500_v34 = vor.u32 %v1807_v28, %v1499_v24  ;;  %v1491_v36 = vld [vmem:[#allocation5 + $0x220] sm:$0xf] }
  0x3a   :  { %888 = vmatpush.bf16.msrb.mxu2 %v1660_v43  ;;  %826 = vmatmul.bf16.vlgmr.msra.gmra.mxu1 %v2066_v8  ;;  %v1839_v32 = vld [vmem:[#allocation5 + $0x334] sm:$0xf0]  ;;  %v1564_v35 = vor.u32 %v1823_v30, %v1563_v29  ;;  %v1742_v37 = vld [vmem:[#allocation5 + $0x34] sm:$0xf]  ;;  %v1245_v38 = vld [vmem:[#allocation5 + $0x38] sm:$0xf0] }
  0x3b   :  { %854 = vmatmul.bf16.vlgmr.msra.gmra.mxu3 %v2069_v20  ;;  %v1628_v39 = vor.u32 %v1839_v32, %v1627_v31  ;;  %v1805_v40 = vld [vmem:[#allocation5 + $0x224] sm:$0xf0]  ;;  %v1555_v41 = vld [vmem:[#allocation5 + $0x2a0] sm:$0xf]  ;;  %v1248_v45 = vor.u32 %v1742_v37, %v1245_v38  ;;  %v1483_v48 = vld [vmem:[#allocation5 + $0x210] sm:$0xf] }
  0x3c   :  { %902 = vmatpush.bf16.msrb.mxu3 %v1280_v51  ;;  %861 = vmatpush.bf16.msrb.mxu0 %v1524_v56  ;;  %v1821_v42 = vld [vmem:[#allocation5 + $0x2a4] sm:$0xf0]  ;;  %v1619_v43 = vld [vmem:[#allocation5 + $0x320] sm:$0xf]  ;;  %v1492_v46 = vor.u32 %v1805_v40, %v1491_v36  ;;  %v1740_v49 = vld [vmem:[#allocation5 + $0x24] sm:$0xf] }
  0x3d   :  { %875 = vmatpush.bf16.msrb.mxu1 %v1588_v57  ;;  %v1837_v44 = vld [vmem:[#allocation5 + $0x324] sm:$0xf0]  ;;  %v1556_v47 = vor.u32 %v1821_v42, %v1555_v41  ;;  %v1237_v50 = vld [vmem:[#allocation5 + $0x28] sm:$0xf0]  ;;  %v1803_v52 = vld [vmem:[#allocation5 + $0x214] sm:$0xf0] }
  0x3e   :  { %889 = vmatpush.bf16.msrb.mxu2 %v1652_v62  ;;  %v1620_v51 = vor.u32 %v1837_v44, %v1619_v43  ;;  %v1547_v54 = vld [vmem:[#allocation5 + $0x290] sm:$0xf]  ;;  %v1819_v55 = vld [vmem:[#allocation5 + $0x294] sm:$0xf0]  ;;  %v1240_v58 = vor.u32 %v1740_v49, %v1237_v50  ;;  %v1475_v59 = vld [vmem:[#allocation5 + $0x200] sm:$0xf]  ;;  %v1484_v0 = vor.u32 %v1803_v52, %v1483_v48 }
  0x3f   :  { %v1611_v56 = vld [vmem:[#allocation5 + $0x310] sm:$0xf]  ;;  %v1835_v57 = vld [vmem:[#allocation5 + $0x314] sm:$0xf0]  ;;  %v1801_v60 = vld [vmem:[#allocation5 + $0x204] sm:$0xf0]  ;;  %v1548_v1 = vor.u32 %v1819_v55, %v1547_v54 }
  0x40   :  { %903 = vmatpush.bf16.msrb.mxu3 %v1272_v5  ;;  %862 = vmatpush.bf16.msrb.mxu0 %v1516_v9  ;;  %v1539_v62 = vld [vmem:[#allocation5 + $0x280] sm:$0xf]  ;;  %v1817_v63 = vld [vmem:[#allocation5 + $0x284] sm:$0xf0]  ;;  %v1738_v4 = vld [vmem:[#allocation5 + $0x14] sm:$0xf]  ;;  %v1612_v6 = vor.u32 %v1835_v57, %v1611_v56  ;;  %v1476_v19 = vor.u32 %v1801_v60, %v1475_v59 }
  0x41   :  { %876 = vmatpush.bf16.msrb.mxu1 %v1580_v10  ;;  %v1603_v2 = vld [vmem:[#allocation5 + $0x300] sm:$0xf]  ;;  %v1833_v3 = vld [vmem:[#allocation5 + $0x304] sm:$0xf0]  ;;  %v1229_v5 = vld [vmem:[#allocation5 + $0x18] sm:$0xf0] }
  0x42   :  { %890 = vmatpush.bf16.msrb.mxu2 %v1644_v14  ;;  %v1766_v7 = vld [vmem:[#allocation5 + $0xf4] sm:$0xf]  ;;  %v1341_v9 = vld [vmem:[#allocation5 + $0xf8] sm:$0xf0]  ;;  %v1207_v12 = vld [vmem:[#allocation2 + $0x10] sm:$0xf]  ;;  %v1232_v14 = vor.u32 %v1738_v4, %v1229_v5  ;;  %v1604_v25 = vor.u32 %v1833_v3, %v1603_v2 }
  0x43   :  { %v1782_v10 = vld [vmem:[#allocation5 + $0x174] sm:$0xf]  ;;  %v1405_v11 = vld [vmem:[#allocation5 + $0x178] sm:$0xf0]  ;;  %v1215_v15 = vld [vmem:[#allocation2 + $0x18] sm:$0xf]  ;;  %v1344_v26 = vor.u32 %v1766_v7, %v1341_v9 }
  0x44   :  { %904 = vmatpush.bf16.msrb.mxu3 %v1264_v21  ;;  %863 = vmatpush.bf16.msrb.mxu0 %v1508_v22  ;;  %v1734_v13 = vld [vmem:[#allocation2 + $0x28] sm:$0xf0]  ;;  %v1735_v16 = vld [vmem:[#allocation2 + $0x30] sm:$0xf0]  ;;  %v1540_v21 = vor.u32 %v1817_v63, %v1539_v62  ;;  %v1736_v24 = vld [vmem:[#allocation5 + $0x4] sm:$0xf]  ;;  %v1408_v30 = vor.u32 %v1782_v10, %v1405_v11 }
  0x45   :  { %877 = vmatpush.bf16.msrb.mxu1 %v1572_v23  ;;  %v1798_v17 = vld [vmem:[#allocation5 + $0x1f4] sm:$0xf]  ;;  %v1469_v18 = vld [vmem:[#allocation5 + $0x1f8] sm:$0xf0]  ;;  %v1209_v23 = vld [vmem:[#allocation2 + $0x2c] sm:$0xf0]  ;;  %v2076_v40 = vor.u32 %v1735_v16, %v1215_v15 }
  0x46   :  { %891 = vmatpush.bf16.msrb.mxu2 %v1636_v27  ;;  %v1731_v22 = vld [vmem:[#allocation2 + $0x14] sm:$0xf]  ;;  %v1221_v27 = vld [vmem:[#allocation5 + $0x8] sm:$0xf0]  ;;  %v1764_v28 = vld [vmem:[#allocation5 + $0xe4] sm:$0xf]  ;;  %v1472_v31 = vor.u32 %v1798_v17, %v1469_v18 }
  0x47   :  { %v1333_v29 = vld [vmem:[#allocation5 + $0xe8] sm:$0xf0]  ;;  %v1780_v32 = vld [vmem:[#allocation5 + $0x164] sm:$0xf]  ;;  %v2074_v36 = vor.u32 %v1731_v22, %v1209_v23  ;;  %v1224_v41 = vor.u32 %v1736_v24, %v1221_v27  ;;  %v1762_v44 = vld [vmem:[#allocation5 + $0xd4] sm:$0xf] }
  0x48   :  { %905 = vmatpush.bf16.msrb.mxu3 %v1256_v33  ;;  %864 = vmatpush.bf16.msrb.mxu0 %v1500_v34  ;;  %v1814_v33 = vld [vmem:[#allocation5 + $0x274] sm:$0xf]  ;;  %v1533_v34 = vld [vmem:[#allocation5 + $0x278] sm:$0xf0]  ;;  %v1397_v37 = vld [vmem:[#allocation5 + $0x168] sm:$0xf0]  ;;  %v1336_v42 = vor.u32 %v1764_v28, %v1333_v29 }
  0x49   :  { %878 = vmatpush.bf16.msrb.mxu1 %v1564_v35  ;;  %v2072_v35 = vor.u32 %v1734_v13, %v1207_v12  ;;  %v1796_v38 = vld [vmem:[#allocation5 + $0x1e4] sm:$0xf]  ;;  %v1536_v43 = vor.u32 %v1814_v33, %v1533_v34  ;;  %v1778_v48 = vld [vmem:[#allocation5 + $0x154] sm:$0xf]  ;;  %v1525_v50 = vld [vmem:[#allocation5 + $0x268] sm:$0xf0] }
  0x4a   :  { %892 = vmatpush.bf16.msrb.mxu2 %v1628_v39  ;;  %v1461_v39 = vld [vmem:[#allocation5 + $0x1e8] sm:$0xf0]  ;;  %v1812_v49 = vld [vmem:[#allocation5 + $0x264] sm:$0xf]  ;;  %v1794_v52 = vld [vmem:[#allocation5 + $0x1d4] sm:$0xf] }
  0x4b   :  { %v1453_v54 = vld [vmem:[#allocation5 + $0x1d8] sm:$0xf0]  ;;  %v1528_v56 = vor.u32 %v1812_v49, %v1525_v50  ;;  %v1760_v57 = vld [vmem:[#allocation5 + $0xc4] sm:$0xf]  ;;  %v1810_v63 = vld [vmem:[#allocation5 + $0x254] sm:$0xf] }
  0x4c   :  { %906 = vmatpush.bf16.msrb.mxu3 %v1248_v45  ;;  %865 = vmatpush.bf16.msrb.mxu0 %v1492_v46  ;;  %v1325_v45 = vld [vmem:[#allocation5 + $0xd8] sm:$0xf0]  ;;  %v1400_v46 = vor.u32 %v1780_v32, %v1397_v37  ;;  %v1456_v60 = vor.u32 %v1794_v52, %v1453_v54  ;;  %v1776_v62 = vld [vmem:[#allocation5 + $0x144] sm:$0xf]  ;;  %v1445_v3 = vld [vmem:[#allocation5 + $0x1c8] sm:$0xf0] }
  0x4d   :  { %879 = vmatpush.bf16.msrb.mxu1 %v1556_v47  ;;  %v1464_v47 = vor.u32 %v1796_v38, %v1461_v39  ;;  %v1328_v55 = vor.u32 %v1762_v44, %v1325_v45  ;;  %v1792_v2 = vld [vmem:[#allocation5 + $0x1c4] sm:$0xf]  ;;  %v1309_v7 = vld [vmem:[#allocation5 + $0xb8] sm:$0xf0]  ;;  %v1774_v11 = vld [vmem:[#allocation5 + $0x134] sm:$0xf] }
  0x4e   :  { %893 = vmatpush.bf16.msrb.mxu2 %v1620_v51  ;;  %v1389_v51 = vld [vmem:[#allocation5 + $0x158] sm:$0xf0]  ;;  %v1448_v10 = vor.u32 %v1792_v2, %v1445_v3  ;;  %v1808_v12 = vld [vmem:[#allocation5 + $0x244] sm:$0xf]  ;;  %v1509_v13 = vld [vmem:[#allocation5 + $0x248] sm:$0xf0] }
  0x4f   :  { %v1392_v59 = vor.u32 %v1778_v48, %v1389_v51  ;;  %v1790_v15 = vld [vmem:[#allocation5 + $0x1b4] sm:$0xf]  ;;  %v1437_v16 = vld [vmem:[#allocation5 + $0x1b8] sm:$0xf0]  ;;  %v1756_v18 = vld [vmem:[#allocation5 + $0xa4] sm:$0xf] }
  0x50   :  { %907 = vmatpush.bf16.msrb.mxu3 %v1240_v58  ;;  %866 = vmatpush.bf16.msrb.mxu0 %v1484_v0  ;;  %v1317_v58 = vld [vmem:[#allocation5 + $0xc8] sm:$0xf0]  ;;  %v1517_v0 = vld [vmem:[#allocation5 + $0x258] sm:$0xf0]  ;;  %v1440_v23 = vor.u32 %v1790_v15, %v1437_v16  ;;  %v1806_v24 = vld [vmem:[#allocation5 + $0x234] sm:$0xf] }
  0x51   :  { %880 = vmatpush.bf16.msrb.mxu1 %v1548_v1  ;;  %v1381_v1 = vld [vmem:[#allocation5 + $0x148] sm:$0xf0]  ;;  %v1320_v4 = vor.u32 %v1760_v57, %v1317_v58  ;;  %v1520_v5 = vor.u32 %v1810_v63, %v1517_v0  ;;  %v1788_v27 = vld [vmem:[#allocation5 + $0x1a4] sm:$0xf]  ;;  %v1293_v32 = vld [vmem:[#allocation5 + $0x98] sm:$0xf0] }
  0x52   :  { %894 = vmatpush.bf16.msrb.mxu2 %v1612_v6  ;;  %v1758_v6 = vld [vmem:[#allocation5 + $0xb4] sm:$0xf]  ;;  %v1384_v9 = vor.u32 %v1776_v62, %v1381_v1  ;;  %v1429_v28 = vld [vmem:[#allocation5 + $0x1a8] sm:$0xf0]  ;;  %v1804_v38 = vld [vmem:[#allocation5 + $0x224] sm:$0xf] }
  0x53   :  { %v1312_v17 = vor.u32 %v1758_v6, %v1309_v7  ;;  %v1432_v34 = vor.u32 %v1788_v27, %v1429_v28  ;;  %v1770_v37 = vld [vmem:[#allocation5 + $0x114] sm:$0xf]  ;;  %v1493_v39 = vld [vmem:[#allocation5 + $0x228] sm:$0xf0]  ;;  %v1768_v48 = vld [vmem:[#allocation5 + $0x104] sm:$0xf] }
  0x54   :  { %908 = vmatpush.bf16.msrb.mxu3 %v1232_v14  ;;  %867 = vmatpush.bf16.msrb.mxu0 %v1476_v19  ;;  %v1373_v14 = vld [vmem:[#allocation5 + $0x138] sm:$0xf0]  ;;  %v1301_v19 = vld [vmem:[#allocation5 + $0xa8] sm:$0xf0]  ;;  %v1496_v45 = vor.u32 %v1804_v38, %v1493_v39  ;;  %v1802_v52 = vld [vmem:[#allocation5 + $0x214] sm:$0xf] }
  0x55   :  { %881 = vmatpush.bf16.msrb.mxu1 %v1540_v21  ;;  %v1772_v21 = vld [vmem:[#allocation5 + $0x124] sm:$0xf]  ;;  %v1376_v22 = vor.u32 %v1774_v11, %v1373_v14  ;;  %v1304_v29 = vor.u32 %v1756_v18, %v1301_v19  ;;  %v1349_v51 = vld [vmem:[#allocation5 + $0x108] sm:$0xf0]  ;;  %v1485_v54 = vld [vmem:[#allocation5 + $0x218] sm:$0xf0] }
  0x56   :  { %895 = vmatpush.bf16.msrb.mxu2 %v1604_v25  ;;  %v1501_v25 = vld [vmem:[#allocation5 + $0x238] sm:$0xf0]  ;;  %v1846_v57 = vld [vmem:[#allocation5 + $0x374] sm:$0xf]  ;;  %v1488_v63 = vor.u32 %v1802_v52, %v1485_v54  ;;  %v1352_v0 = vor.u32 %v1768_v48, %v1349_v51  ;;  %v1800_v2 = vld [vmem:[#allocation5 + $0x204] sm:$0xf] }
  0x57   :  { %868 = vmatmul.bf16.vlgmr.msrb.gmra.mxu0 %v2072_v35  ;;  %v1661_v58 = vld [vmem:[#allocation5 + $0x378] sm:$0xf0]  ;;  %v1477_v3 = vld [vmem:[#allocation5 + $0x208] sm:$0xf0]  ;;  %v1828_v6 = vld [vmem:[#allocation5 + $0x2e4] sm:$0xf] }
  0x58   :  { %916 = vmatpush.bf16.msra.mxu0 %v1344_v26  ;;  %882 = vmatmul.bf16.vlgmr.msrb.gmra.mxu1 %v2074_v36  ;;  %v1365_v26 = vld [vmem:[#allocation5 + $0x128] sm:$0xf0]  ;;  %v1480_v11 = vor.u32 %v1800_v2, %v1477_v3  ;;  %v1826_v14 = vld [vmem:[#allocation5 + $0x2d4] sm:$0xf]  ;;  %v1581_v15 = vld [vmem:[#allocation5 + $0x2d8] sm:$0xf0] }
  0x59   :  { %930 = vmatpush.bf16.msra.mxu1 %v1408_v30  ;;  %896 = vmatmul.bf16.vlgmr.msrb.gmra.mxu2 %v2076_v40  ;;  %v1504_v30 = vor.u32 %v1806_v24, %v1501_v25  ;;  %v1368_v33 = vor.u32 %v1772_v21, %v1365_v26  ;;  %v1589_v7 = vld [vmem:[#allocation5 + $0x2e8] sm:$0xf0]  ;;  %v1842_v16 = vld [vmem:[#allocation5 + $0x354] sm:$0xf]  ;;  %v1824_v19 = vld [vmem:[#allocation5 + $0x2c4] sm:$0xf] }
  0x5a   :  { %944 = vmatpush.bf16.msra.mxu2 %v1472_v31  ;;  %909 = vmatpush.bf16.msrb.mxu3 %v1224_v41  ;;  %v1754_v31 = vld [vmem:[#allocation5 + $0x94] sm:$0xf]  ;;  %v1357_v41 = vld [vmem:[#allocation5 + $0x118] sm:$0xf0]  ;;  %v1573_v21 = vld [vmem:[#allocation5 + $0x2c8] sm:$0xf0] }
  0x5b   :  { %v1296_v44 = vor.u32 %v1754_v31, %v1293_v32  ;;  %v1360_v49 = vor.u32 %v1770_v37, %v1357_v41  ;;  %v1576_v24 = vor.u32 %v1824_v19, %v1573_v21  ;;  %v1822_v25 = vld [vmem:[#allocation5 + $0x2b4] sm:$0xf]  ;;  %v1565_v26 = vld [vmem:[#allocation5 + $0x2b8] sm:$0xf0]  ;;  %v1836_v31 = vld [vmem:[#allocation5 + $0x324] sm:$0xf] }
  0x5c   :  { %917 = vmatpush.bf16.msra.mxu0 %v1336_v42  ;;  %v1786_v42 = vld [vmem:[#allocation5 + $0x194] sm:$0xf]  ;;  %v1568_v28 = vor.u32 %v1822_v25, %v1565_v26  ;;  %v1621_v32 = vld [vmem:[#allocation5 + $0x328] sm:$0xf0]  ;;  %v1549_v37 = vld [vmem:[#allocation5 + $0x298] sm:$0xf0] }
  0x5d   :  { %931 = vmatpush.bf16.msra.mxu1 %v1400_v46  ;;  %910 = vmatmul.bf16.vlgmr.msrb.gmra.mxu3 %v2060_v53  ;;  %v1512_v53 = vor.u32 %v1808_v12, %v1509_v13  ;;  %v1752_v46 = vld [vmem:[#allocation5 + $0x84] sm:$0xf]  ;;  %v1592_v12 = vor.u32 %v1828_v6, %v1589_v7  ;;  %v1838_v27 = vld [vmem:[#allocation5 + $0x334] sm:$0xf]  ;;  %v1613_v39 = vld [vmem:[#allocation5 + $0x318] sm:$0xf0] }
  0x5e   :  { %958 = vmatpush.bf16.msra.mxu3 %v1536_v43  ;;  %945 = vmatpush.bf16.msra.mxu2 %v1464_v47  ;;  %v1421_v43 = vld [vmem:[#allocation5 + $0x198] sm:$0xf0]  ;;  %v1285_v47 = vld [vmem:[#allocation5 + $0x88] sm:$0xf0]  ;;  %v1834_v38 = vld [vmem:[#allocation5 + $0x314] sm:$0xf] }
  0x5f   :  { %v1424_v50 = vor.u32 %v1786_v42, %v1421_v43  ;;  %v1288_v62 = vor.u32 %v1752_v46, %v1285_v47  ;;  %v1616_v42 = vor.u32 %v1834_v38, %v1613_v39  ;;  %v1816_v43 = vld [vmem:[#allocation5 + $0x284] sm:$0xf]  ;;  %v1605_v46 = vld [vmem:[#allocation5 + $0x308] sm:$0xf0]  ;;  %v1851_v54 = vld [vmem:[#allocation8 + $0x18] sm:$0xff]  ;;  %s2014_s17 = smov [#allocation10]  }
  0x60   :  { %918 = vmatpush.bf16.msra.mxu0 %v1328_v55  ;;  %v1830_v55 = vld [vmem:[#allocation5 + $0x2f4] sm:$0xf]  ;;  %v1853_v51 = vld [vmem:[#allocation8 + $0x28] sm:$0xff]  ;;  %v1852_v52 = vld [vmem:[#allocation8 + $0x20] sm:$0xff]  ;;  %s1172_s18 = sshll.u32 %s2014_s17, 4  ;;  %s1174_s21 = sshll.u32 %s2102_s5, 4  ;;  %s1173_s18 = int_to_ptr.vmem [resolvable:$true] %s1172_s18  ;;  %s1175_s21 = int_to_ptr.hbm [resolvable:$true] %s1174_s21 }
  0x61   :  { %932 = vmatpush.bf16.msra.mxu1 %v1392_v59  ;;  %v1784_v59 = vld [vmem:[#allocation5 + $0x184] sm:$0xf]  ;;  %v1861_v25 = vld [vmem:[#allocation8 + $0x68] sm:$0xff] }
  0x62   :  { %959 = vmatpush.bf16.msra.mxu3 %v1528_v56  ;;  %946 = vmatpush.bf16.msra.mxu2 %v1456_v60  ;;  %v1597_v56 = vld [vmem:[#allocation5 + $0x2f8] sm:$0xf0]  ;;  %v1413_v60 = vld [vmem:[#allocation5 + $0x188] sm:$0xf0] }
  0x63   :  { %v1600_v1 = vor.u32 %v1830_v55, %v1597_v56  ;;  %v1850_v55 = vld [vmem:[#allocation8 + $0x10] sm:$0xff] }
  0x64   :  { %919 = vmatpush.bf16.msra.mxu0 %v1320_v4  ;;  %v1664_v4 = vor.u32 %v1846_v57, %v1661_v58  ;;  %v1849_v58 = vld [vmem:[#allocation8 + $0x8] sm:$0xff] }
  0x65   :  { %933 = vmatpush.bf16.msra.mxu1 %v1384_v9  ;;  %v1844_v9 = vld [vmem:[#allocation5 + $0x364] sm:$0xf] }
  0x66   :  { %960 = vmatpush.bf16.msra.mxu3 %v1520_v5  ;;  %947 = vmatpush.bf16.msra.mxu2 %v1448_v10  ;;  %v1416_v5 = vor.u32 %v1784_v59, %v1413_v60  ;;  %v1653_v10 = vld [vmem:[#allocation5 + $0x368] sm:$0xf0]  ;;  %v202_v59 = vld [vmem:[#allocation7] sm:$0x3] }
  0x67   :  { %v1656_v13 = vor.u32 %v1844_v9, %v1653_v10  ;;  %v204_v60 = vperm.slane %v202_v59, 0 }
  0x68   :  { %920 = vmatpush.bf16.msra.mxu0 %v1312_v17  ;;  %v1645_v17 = vld [vmem:[#allocation5 + $0x358] sm:$0xf0] }
  0x69   :  { %934 = vmatpush.bf16.msra.mxu1 %v1376_v22  ;;  %v1648_v18 = vor.u32 %v1842_v16, %v1645_v17  ;;  %v1840_v22 = vld [vmem:[#allocation5 + $0x344] sm:$0xf]  ;;  %v1863_v17 = vld [vmem:[#allocation8 + $0x78] sm:$0xff] }
  0x6a   :  { %961 = vmatpush.bf16.msra.mxu3 %v1512_v53  ;;  %948 = vmatpush.bf16.msra.mxu2 %v1440_v23  ;;  %v1584_v53 = vor.u32 %v1826_v14, %v1581_v15  ;;  %v1637_v23 = vld [vmem:[#allocation5 + $0x348] sm:$0xf0] }
  0x6c   :  { %921 = vmatpush.bf16.msra.mxu0 %v1304_v29  ;;  %v1820_v29 = vld [vmem:[#allocation5 + $0x2a4] sm:$0xf] }
  0x6d   :  { %935 = vmatpush.bf16.msra.mxu1 %v1368_v33  ;;  %v1624_v33 = vor.u32 %v1836_v31, %v1621_v32  ;;  %v1857_v31 = vld [vmem:[#allocation8 + $0x48] sm:$0xff]  ;;  %v1856_v32 = vld [vmem:[#allocation8 + $0x40] sm:$0xff] }
  0x6e   :  { %962 = vmatpush.bf16.msra.mxu3 %v1504_v30  ;;  %949 = vmatpush.bf16.msra.mxu2 %v1432_v34  ;;  %v1557_v30 = vld [vmem:[#allocation5 + $0x2a8] sm:$0xf0]  ;;  %v1818_v34 = vld [vmem:[#allocation5 + $0x294] sm:$0xf] }
  0x6f   :  { %v1552_v41 = vor.u32 %v1818_v34, %v1549_v37 }
  0x70   :  { %922 = vmatpush.bf16.msra.mxu0 %v1296_v44  ;;  %v1541_v44 = vld [vmem:[#allocation5 + $0x288] sm:$0xf0] }
  0x71   :  { %936 = vmatpush.bf16.msra.mxu1 %v1360_v49  ;;  %v1544_v47 = vor.u32 %v1816_v43, %v1541_v44  ;;  %v1855_v49 = vld [vmem:[#allocation8 + $0x38] sm:$0xff] }
  0x72   :  { %963 = vmatpush.bf16.msra.mxu3 %v1496_v45  ;;  %950 = vmatpush.bf16.msra.mxu2 %v1424_v50  ;;  %v1832_v45 = vld [vmem:[#allocation5 + $0x304] sm:$0xf]  ;;  %v1854_v50 = vld [vmem:[#allocation8 + $0x30] sm:$0xff] }
  0x73   :  { %v1608_v48 = vor.u32 %v1832_v45, %v1605_v46 }
  0x74   :  { %923 = vmatpush.bf16.msra.mxu0 %v1288_v62 }
  0x75   :  { %937 = vmatpush.bf16.msra.mxu1 %v1352_v0 }
  0x76   :  { %964 = vmatpush.bf16.msra.mxu3 %v1488_v63  ;;  %951 = vmatpush.bf16.msra.mxu2 %v1416_v5 }
  0x77   :  { %924 = vmatmul.bf16.vlgmr.msra.gmra.mxu0 %v2066_v8  ;;  %v1640_v8 = vor.u32 %v1840_v22, %v1637_v23 }
  0x78   :  { %972 = vmatpush.bf16.msrb.mxu0 %v1600_v1  ;;  %938 = vmatmul.bf16.vlgmr.msra.gmra.mxu1 %v2062_v61  ;;  %v1629_v61 = vld [vmem:[#allocation5 + $0x338] sm:$0xf0] }
  0x79   :  { %986 = vmatpush.bf16.msrb.mxu1 %v1664_v4  ;;  %952 = vmatmul.bf16.vlgmr.msra.gmra.mxu2 %v2069_v20  ;;  %v1632_v20 = vor.u32 %v1838_v27, %v1629_v61 }
  0x7a   :  { %965 = vmatpush.bf16.msra.mxu3 %v1480_v11  ;;  %1138 = vmatpush.bf16.msrb.mxu2 %v1855_v49 }
  0x7c   :  { %973 = vmatpush.bf16.msrb.mxu0 %v1592_v12 }
  0x7d   :  { %987 = vmatpush.bf16.msrb.mxu1 %v1656_v13  ;;  %966 = vmatmul.bf16.vlgmr.msra.gmra.mxu3 %v2072_v35  ;;  %v1560_v35 = vor.u32 %v1820_v29, %v1557_v30  ;;  %v1858_v29 = vld [vmem:[#allocation8 + $0x50] sm:$0xff] }
  0x7e   :  { %1139 = vmatpush.bf16.msrb.mxu2 %v1854_v50  ;;  %1152 = vmatpush.bf16.msrb.mxu3 %v1863_v17 }
  0x80   :  { %974 = vmatpush.bf16.msrb.mxu0 %v1584_v53 }
  0x81   :  { %988 = vmatpush.bf16.msrb.mxu1 %v1648_v18 }
  0x82   :  { %1140 = vmatpush.bf16.msrb.mxu2 %v1853_v51 }
  0x84   :  { %975 = vmatpush.bf16.msrb.mxu0 %v1576_v24  ;;  %v1862_v24 = vld [vmem:[#allocation8 + $0x70] sm:$0xff] }
  0x85   :  { %989 = vmatpush.bf16.msrb.mxu1 %v1640_v8  ;;  %1153 = vmatpush.bf16.msrb.mxu3 %v1862_v24 }
  0x86   :  { %1141 = vmatpush.bf16.msrb.mxu2 %v1852_v52 }
  0x88   :  { %976 = vmatpush.bf16.msrb.mxu0 %v1568_v28  ;;  %v1860_v28 = vld [vmem:[#allocation8 + $0x60] sm:$0xff] }
  0x89   :  { %990 = vmatpush.bf16.msrb.mxu1 %v1632_v20  ;;  %1154 = vmatpush.bf16.msrb.mxu3 %v1861_v25  ;;  %v1859_v20 = vld [vmem:[#allocation8 + $0x58] sm:$0xff] }
  0x8a   :  { %1142 = vmatpush.bf16.msrb.mxu2 %v1851_v54 }
  0x8c   :  { %977 = vmatpush.bf16.msrb.mxu0 %v1560_v35 }
  0x8d   :  { %991 = vmatpush.bf16.msrb.mxu1 %v1624_v33  ;;  %1155 = vmatpush.bf16.msrb.mxu3 %v1860_v28  ;;  %v205_v33 = vperm.slane %v202_v59, 1 }
  0x8e   :  { %1143 = vmatpush.bf16.msrb.mxu2 %v1850_v55 }
  0x90   :  { %978 = vmatpush.bf16.msrb.mxu0 %v1552_v41 }
  0x91   :  { %992 = vmatpush.bf16.msrb.mxu1 %v1616_v42  ;;  %1156 = vmatpush.bf16.msrb.mxu3 %v1859_v20 }
  0x92   :  { %1144 = vmatpush.bf16.msrb.mxu2 %v1849_v58 }
  0x94   :  { %979 = vmatpush.bf16.msrb.mxu0 %v1544_v47 }
  0x95   :  { %993 = vmatpush.bf16.msrb.mxu1 %v1608_v48  ;;  %1157 = vmatpush.bf16.msrb.mxu3 %v1858_v29 }
  0x97   :  { %980 = vmatmul.bf16.vlgmr.msrb.gmra.mxu0 %v2074_v36  ;;  %v1848_v36 = vld [vmem:[#allocation8] sm:$0xff] }
  0x98   :  { %994 = vmatmul.bf16.vlgmr.msrb.gmra.mxu1 %v2076_v40  ;;  %1145 = vmatpush.bf16.msrb.mxu2 %v1848_v36 }
  0x99   :  { %1158 = vmatpush.bf16.msrb.mxu3 %v1857_v31 }
  0x9d   :  { %1159 = vmatpush.bf16.msrb.mxu3 %v1856_v32 }
  0xb4   :  { %v813_v56 = vpop.f32.mrf.mxu0 }
  0xb5   :  { %v814_v62 = vadd.f32 %v813_v56, %v204_v60 }
  0xb7   :  { %v827_v57 = vpop.f32.mrf.mxu1 }
  0xb8   :  { %v828_v1 = vadd.f32 %v827_v57, %v814_v62 }
  0xbc   :  { %v841_v40 = vpop.f32.mrf.mxu2  ;;  %v815_v63 = vpop.f32.mrf.mxu0 }
  0xbd   :  { %v816_v3 = vadd.f32 %v815_v63, %v204_v60  ;;  %v842_v5 = vadd.f32 %v841_v40, %v828_v1 }
  0xbe   :  { %v855_v2 = vpop.f32.mrf.mxu3 }
  0xbf   :  { %v829_v0 = vpop.f32.mrf.mxu1  ;;  %v856_v10 = vadd.f32 %v855_v2, %v842_v5 }
  0xc0   :  { %v830_v6 = vadd.f32 %v829_v0, %v816_v3  ;;  %v1875_v3 = vld [vmem:[%s2101_s4] ss:$0 sm:$0xff] }
  0xc4   :  { %v843_v4 = vpop.f32.mrf.mxu2 }
  0xc5   :  { %v844_v11 = vadd.f32 %v843_v4, %v830_v6 }
  0xc6   :  { %v857_v12 = vpop.f32.mrf.mxu3 }
  0xc7   :  { %v858_v15 = vadd.f32 %v857_v12, %v844_v11 }
  0xd4   :  { %v869_v7 = vpop.f32.mrf.mxu0 }
  0xd5   :  { %v883_v9 = vpop.f32.mrf.mxu1  ;;  %v870_v13 = vadd.f32 %v869_v7, %v856_v10 }
  0xd7   :  { %v884_v53 = vadd.f32 %v883_v9, %v870_v13 }
  0xdc   :  { %v897_v14 = vpop.f32.mrf.mxu2  ;;  %v871_v16 = vpop.f32.mrf.mxu0 }
  0xdd   :  { %v872_v18 = vadd.f32 %v871_v16, %v858_v15  ;;  %v885_v19 = vpop.f32.mrf.mxu1  ;;  %v898_v21 = vadd.f32 %v897_v14, %v884_v53 }
  0xdf   :  { %v886_v22 = vadd.f32 %v885_v19, %v872_v18  ;;  %v1000_v26 = vmax.f32 %v898_v21, 0.0 }
  0xe0   :  { %v911_v30 = vpop.f32.mrf.mxu3 }
  0xe1   :  { %v912_v38 = vadd.f32 %v911_v30, %v205_v33 }
  0xe4   :  { %v899_v23 = vpop.f32.mrf.mxu2 }
  0xe5   :  { %v900_v8 = vadd.f32 %v899_v23, %v886_v22 }
  0xe7   :  { %v1002_v27 = vmax.f32 %v900_v8, 0.0 }
  0xe8   :  { %v913_v37 = vpop.f32.mrf.mxu3 }
  0xe9   :  { %v1004_v61 = vpack.c.bf16 %v1002_v27, %v1000_v26  ;;  %v914_v41 = vadd.f32 %v913_v37, %v205_v33 }
  0xeb   :  { %1146 = vmatmul.bf16.vlgmr.msrb.gmra.mxu2 %v1004_v61 }
  0xf4   :  { %v925_v35 = vpop.f32.mrf.mxu0 }
  0xf5   :  { %v939_v34 = vpop.f32.mrf.mxu1  ;;  %v926_v42 = vadd.f32 %v925_v35, %v912_v38 }
  0xf7   :  { %v940_v46 = vadd.f32 %v939_v34, %v926_v42 }
  0xfc   :  { %v953_v39 = vpop.f32.mrf.mxu2  ;;  %v927_v43 = vpop.f32.mrf.mxu0 }
  0xfd   :  { %v941_v44 = vpop.f32.mrf.mxu1  ;;  %v928_v47 = vadd.f32 %v927_v43, %v914_v41  ;;  %v954_v48 = vadd.f32 %v953_v39, %v940_v46 }
  0xff   :  { %v942_v49 = vadd.f32 %v941_v44, %v928_v47 }
 0x100   :  { %v967_v45 = vpop.f32.mrf.mxu3 }
 0x101   :  { %v968_v54 = vadd.f32 %v967_v45, %v954_v48 }
 0x104   :  { %v955_v50 = vpop.f32.mrf.mxu2 }
 0x105   :  { %v956_v55 = vadd.f32 %v955_v50, %v942_v49 }
 0x108   :  { %v969_v56 = vpop.f32.mrf.mxu3 }
 0x109   :  { %v970_v58 = vadd.f32 %v969_v56, %v956_v55 }
 0x114   :  { %v981_v51 = vpop.f32.mrf.mxu0 }
 0x115   :  { %v995_v52 = vpop.f32.mrf.mxu1  ;;  %v982_v57 = vadd.f32 %v981_v51, %v968_v54 }
 0x117   :  { %v996_v36 = vadd.f32 %v995_v52, %v982_v57 }
 0x119   :  { %v1001_v63 = vmax.f32 %v996_v36, 0.0 }
 0x11c   :  { %v983_v59 = vpop.f32.mrf.mxu0 }
 0x11d   :  { %v984_v60 = vadd.f32 %v983_v59, %v970_v58  ;;  %v997_v40 = vpop.f32.mrf.mxu1 }
 0x11f   :  { %v998_v62 = vadd.f32 %v997_v40, %v984_v60 }
 0x121   :  { %v1003_v0 = vmax.f32 %v998_v62, 0.0 }
 0x123   :  { %v1005_v1 = vpack.c.bf16 %v1003_v0, %v1001_v63 }
 0x125   :  { %1160 = vmatmul.bf16.vlgmr.msrb.gmra.mxu3 %v1005_v1 }
 0x16e   :  { %v1147_v2 = vpop.f32.mrf.mxu2 }
 0x16f   :  { %v1148_v4 = vadd.f32 %v1875_v3, %v1147_v2 }
 0x176   :  { %v1149_v7 = vpop.f32.mrf.mxu2 }
 0x177   :  { %v1150_v9 = vadd.f32 %v1875_v3, %v1149_v7 }
 0x1a8   :  { %v1161_v5 = vpop.f32.mrf.mxu3 }
 0x1a9   :  { %v1162_v6 = vadd.f32 %v1161_v5, %v1148_v4 }
 0x1ab   :  { %1166 = vst [vmem:[#allocation10] sm:$0xff] %v1162_v6 }
 0x1b0   :  { %v1163_v10 = vpop.f32.mrf.mxu3 }
 0x1b1   :  { %v1164_v11 = vadd.f32 %v1163_v10, %v1150_v9 }
 0x1b3   :  { %1167 = vst [vmem:[#allocation10 + $0x8] sm:$0xff] %v1164_v11 }
 0x1b4   :  { %1180 = dma.vmem_to_hbm [thread:$0]  %s1173_s18, 256, %s1175_s21, [#allocation4], %s2005_s26, %s2005_s26, %s2006_s27  }
 0x1b5   :  { %2002 = dma.done.wait [#allocation4], 256  }
 0x1b6   :  { %2003 = vsyncadd [#allocation4], 4294967040 }
 0x1b7   :  { %1185 = vsyncpa [#allocation3], 1 }
 0x1b8   :  { %1186 = vsyncpa [#allocation6], 1 }
 0x1b9   :  { %1187 = vsyncpa [#allocation9], 1 }
 0x1ba   :  { %1188 = vsyncpa [#allocation4], 1 }

</bundles_post_ra>
